<compile_context>
chip_gen: v7x
topology: tpu7x:2x2x1
jax: 0.10.0
libtpu: 0.0.40
codegen_flags: <defaults>
</compile_context>

<pallas_src>
import jax
import jax.numpy as jnp
from jax.experimental import pallas as pl
from jax.experimental.pallas import tpu as pltpu


def _round_up(x, m):
    return (x + m - 1) // m * m


def _fused_residual_mlp_kernel(x_ref, w1_ref, b1_ref, w2_ref, b2_ref, o_ref, acc_ref):
    """One (M-tile, d_ff-tile) grid step of  out = ReLU(x@W1+b1)@W2 + b2 + x."""
    j = pl.program_id(1)

    @pl.when(j == 0)
    def _():
        acc_ref[...] = jnp.zeros_like(acc_ref)

    x = x_ref[...]                                           # (tm, D) f32
    # First matmul: bf16 operands, f32 accumulation; bias + ReLU in f32.
    h = jnp.dot(x.astype(jnp.bfloat16), w1_ref[...],
                preferred_element_type=jnp.float32)
    h = jnp.maximum(h + b1_ref[...], 0.0)                    # (tm, tf) f32
    # Second matmul: accumulate this d_ff chunk's contribution in VMEM.
    acc_ref[...] += jnp.dot(h.astype(jnp.bfloat16), w2_ref[...],
                            preferred_element_type=jnp.float32)

    @pl.when(j == pl.num_programs(1) - 1)
    def _():
        # Epilogue fused into the last reduction step: bias + residual add,
        # single lane-dense (tm, 128) f32 store.
        o_ref[...] = (acc_ref[...] + b2_ref[...] + x_ref[...]).astype(o_ref.dtype)


def residual_mlp_block(x, w1_bf16, b1, w2_bf16, b2, *, tm=256, tf=512):
    """ResidualBlock forward: Linear2(ReLU(Linear1(x))) + x, one fused kernel.

    x: (..., D) f32;  w1: (D, F) bf16;  b1: (F,) f32;  w2: (F, D) bf16;  b2: (D,) f32.
    """
    orig_shape = x.shape
    D = orig_shape[-1]
    F = w1_bf16.shape[1]

    x2 = x.reshape(-1, D)
    M = x2.shape[0]

    # M tiling (multiple of 8; pad rows if needed — padded rows sliced off).
    tm_eff = min(tm, _round_up(M, 8))
    Mp = _round_up(M, tm_eff)
    if Mp != M:
        x2 = jnp.pad(x2, ((0, Mp - M), (0, 0)))

    # d_ff reduction tiling (multiple of 128).
    tf_eff = min(tf, F)
    assert F % tf_eff == 0, "d_ff must be a multiple of the d_ff tile"

    grid = (Mp // tm_eff, F // tf_eff)   # reduction axis last

    out = pl.pallas_call(
        _fused_residual_mlp_kernel,
        out_shape=jax.ShapeDtypeStruct((Mp, D), jnp.float32),
        grid_spec=pltpu.PrefetchScalarGridSpec(
            num_scalar_prefetch=0,
            grid=grid,
            in_specs=[
                pl.BlockSpec((tm_eff, D), lambda i, j: (i, 0)),   # x tile (reused as residual)
                pl.BlockSpec((D, tf_eff), lambda i, j: (0, j)),   # W1 chunk (bf16)
                pl.BlockSpec((1, tf_eff), lambda i, j: (0, j)),   # b1 chunk
                pl.BlockSpec((tf_eff, D), lambda i, j: (j, 0)),   # W2 chunk (bf16)
                pl.BlockSpec((1, D), lambda i, j: (0, 0)),        # b2
            ],
            out_specs=pl.BlockSpec((tm_eff, D), lambda i, j: (i, 0)),
            scratch_shapes=[pltpu.VMEM((tm_eff, D), jnp.float32)],
        ),
        compiler_params=pltpu.CompilerParams(
            dimension_semantics=("parallel", "arbitrary"),
        ),
    )(x2, w1_bf16, b1.reshape(1, F), w2_bf16, b2.reshape(1, D))

    return out[:M].reshape(orig_shape)


# ------------------------------ model wrapper ------------------------------ #

def init_params(key, d_model, d_ff):
    k1, k2, k3, k4 = jax.random.split(key, 4)
    s1 = (1.0 / d_model) ** 0.5
    s2 = (1.0 / d_ff) ** 0.5
    w1 = jax.random.uniform(k1, (d_model, d_ff), jnp.float32, -s1, s1)
    w2 = jax.random.uniform(k2, (d_ff, d_model), jnp.float32, -s2, s2)
    b1 = jax.random.uniform(k3, (d_ff,), jnp.float32, -s1, s1)
    b2 = jax.random.uniform(k4, (d_model,), jnp.float32, -s2, s2)
    return dict(
        w1=w1.astype(jnp.bfloat16), b1=b1,
        w2=w2.astype(jnp.bfloat16), b2=b2,
    )


@jax.jit
def residual_block_forward(x, params):
    return residual_mlp_block(x, params["w1"], params["b1"],
                              params["w2"], params["b2"])


def reference_forward(x, params):
    # Pure-JAX reference (same bf16-stored weights, f32 math everywhere else).
    w1 = params["w1"].astype(jnp.float32)
    w2 = params["w2"].astype(jnp.float32)
    h = jnp.maximum(x @ w1 + params["b1"], 0.0)
    return h @ w2 + params["b2"] + x


if __name__ == "__main__":
    B, S, D_MODEL, D_FF = 2, 8, 128, 1024

    key = jax.random.PRNGKey(0)
    k_x, k_p = jax.random.split(key)
    x = jax.random.normal(k_x, (B, S, D_MODEL), jnp.float32)
    params = init_params(k_p, D_MODEL, D_FF)

    out = residual_block_forward(x, params)
    out = jax.block_until_ready(out)

    assert out.shape == x.shape, out.shape
    assert bool(jnp.all(jnp.isfinite(out)))

    ref = reference_forward(x, params)
    assert bool(jnp.allclose(out, ref, atol=3e-2, rtol=3e-2)), (
        float(jnp.max(jnp.abs(out - ref))))

    print("KERNEL_OK")
</pallas_src>

<mosaic_0001>
module attributes {stable_mosaic.version = 11 : i64} {
  func.func @_fused_residual_mlp_kernel(%arg0: i32, %arg1: i32, %arg2: memref<16x128xf32, #tpu.memory_space<vmem>>, %arg3: memref<128x512xbf16, #tpu.memory_space<vmem>>, %arg4: memref<1x512xf32, #tpu.memory_space<vmem>>, %arg5: memref<512x128xbf16, #tpu.memory_space<vmem>>, %arg6: memref<1x128xf32, #tpu.memory_space<vmem>>, %arg7: memref<16x128xf32, #tpu.memory_space<vmem>>, %arg8: memref<16x128xf32, #tpu.memory_space<vmem>>) attributes {dimension_semantics = [#tpu.dimension_semantics<parallel>, #tpu.dimension_semantics<arbitrary>], iteration_bounds = array<i64: 1, 2>, scalar_prefetch = 0 : i64, scratch_operands = 1 : i64, tpu.core_type = #tpu.core_type<tc>, window_params = [{transform_indices = @transform_0, window_bounds = array<i64: 16, 128>}, {transform_indices = @transform_1, window_bounds = array<i64: 128, 512>}, {transform_indices = @transform_2, window_bounds = array<i64: 1, 512>}, {transform_indices = @transform_3, window_bounds = array<i64: 512, 128>}, {pipeline_mode = #tpu.pipeline_mode<synchronous>, transform_indices = @transform_4, window_bounds = array<i64: 1, 128>}, {transform_indices = @transform_5, window_bounds = array<i64: 16, 128>}]} {
    %c0_i32 = arith.constant 0 : i32
    %0 = arith.cmpi eq, %arg1, %c0_i32 : i32
    %1 = arith.extui %0 : i1 to i32
    %c0_i32_0 = arith.constant 0 : i32
    %2 = arith.cmpi ne, %1, %c0_i32_0 : i32
    scf.if %2 {
      %cst_15 = arith.constant 0.000000e+00 : f32
      %21 = vector.broadcast %cst_15 : f32 to vector<16x128xf32>
      %c0_16 = arith.constant 0 : index
      %c0_17 = arith.constant 0 : index
      %22 = vector.load %arg8[%c0_16, %c0_17] : memref<16x128xf32, #tpu.memory_space<vmem>>, vector<16x128xf32>
      tpu.vector_store %arg8[%c0_16, %c0_17], %21 {strides = array<i32>} : memref<16x128xf32, #tpu.memory_space<vmem>>, vector<16x128xf32>,
    } else {
    }
    %c0 = arith.constant 0 : index
    %c0_1 = arith.constant 0 : index
    %3 = vector.load %arg2[%c0, %c0_1] : memref<16x128xf32, #tpu.memory_space<vmem>>, vector<16x128xf32>
    %4 = arith.truncf %3 : vector<16x128xf32> to vector<16x128xbf16>
    %c0_2 = arith.constant 0 : index
    %c0_3 = arith.constant 0 : index
    %5 = vector.load %arg3[%c0_2, %c0_3] : memref<128x512xbf16, #tpu.memory_space<vmem>>, vector<128x512xbf16>
    %cst = arith.constant dense<0.000000e+00> : vector<16x512xf32>
    %6 = tpu.matmul %4, %5, %cst {dimension_numbers = #tpu.dot_dimension_numbers<[1], [0], [0], [1], [0, 0, 1, 1], [], []>} : vector<16x128xbf16>, vector<128x512xbf16>, vector<16x512xf32> -> vector<16x512xf32>
    %c0_4 = arith.constant 0 : index
    %c0_5 = arith.constant 0 : index
    %7 = vector.load %arg4[%c0_4, %c0_5] : memref<1x512xf32, #tpu.memory_space<vmem>>, vector<1x512xf32>
    %8 = vector.broadcast %7 : vector<1x512xf32> to vector<16x512xf32>
    %9 = arith.addf %6, %8 : vector<16x512xf32>
    %cst_6 = arith.constant 0.000000e+00 : f32
    %10 = vector.broadcast %cst_6 : f32 to vector<16x512xf32>
    %11 = arith.maximumf %9, %10 : vector<16x512xf32>
    %c0_7 = arith.constant 0 : index
    %c0_8 = arith.constant 0 : index
    %12 = vector.load %arg8[%c0_7, %c0_8] : memref<16x128xf32, #tpu.memory_space<vmem>>, vector<16x128xf32>
    %13 = arith.truncf %11 : vector<16x512xf32> to vector<16x512xbf16>
    %c0_9 = arith.constant 0 : index
    %c0_10 = arith.constant 0 : index
    %14 = vector.load %arg5[%c0_9, %c0_10] : memref<512x128xbf16, #tpu.memory_space<vmem>>, vector<512x128xbf16>
    %cst_11 = arith.constant dense<0.000000e+00> : vector<16x128xf32>
    %15 = tpu.matmul %13, %14, %cst_11 {dimension_numbers = #tpu.dot_dimension_numbers<[1], [0], [0], [1], [0, 0, 1, 1], [], []>} : vector<16x512xbf16>, vector<512x128xbf16>, vector<16x128xf32> -> vector<16x128xf32>
    %16 = arith.addf %12, %15 : vector<16x128xf32>
    %c0_12 = arith.constant 0 : index
    %c0_13 = arith.constant 0 : index
    %17 = vector.load %arg8[%c0_12, %c0_13] : memref<16x128xf32, #tpu.memory_space<vmem>>, vector<16x128xf32>
    tpu.vector_store %arg8[%c0_12, %c0_13], %16 {strides = array<i32>} : memref<16x128xf32, #tpu.memory_space<vmem>>, vector<16x128xf32>,
    %c1_i32 = arith.constant 1 : i32
    %18 = arith.cmpi eq, %arg1, %c1_i32 : i32
    %19 = arith.extui %18 : i1 to i32
    %c0_i32_14 = arith.constant 0 : i32
    %20 = arith.cmpi ne, %19, %c0_i32_14 : i32
    scf.if %20 {
      %c0_15 = arith.constant 0 : index
      %c0_16 = arith.constant 0 : index
      %21 = vector.load %arg8[%c0_15, %c0_16] : memref<16x128xf32, #tpu.memory_space<vmem>>, vector<16x128xf32>
      %c0_17 = arith.constant 0 : index
      %c0_18 = arith.constant 0 : index
      %22 = vector.load %arg6[%c0_17, %c0_18] : memref<1x128xf32, #tpu.memory_space<vmem>>, vector<1x128xf32>
      %23 = vector.broadcast %22 : vector<1x128xf32> to vector<16x128xf32>
      %24 = arith.addf %21, %23 : vector<16x128xf32>
      %c0_19 = arith.constant 0 : index
      %c0_20 = arith.constant 0 : index
      %25 = vector.load %arg2[%c0_19, %c0_20] : memref<16x128xf32, #tpu.memory_space<vmem>>, vector<16x128xf32>
      %26 = arith.addf %24, %25 : vector<16x128xf32>
      %c0_21 = arith.constant 0 : index
      %c0_22 = arith.constant 0 : index
      %27 = vector.load %arg7[%c0_21, %c0_22] : memref<16x128xf32, #tpu.memory_space<vmem>>, vector<16x128xf32>
      tpu.vector_store %arg7[%c0_21, %c0_22], %26 {strides = array<i32>} : memref<16x128xf32, #tpu.memory_space<vmem>>, vector<16x128xf32>,
    } else {
    }
    return
  }
  func.func @transform_0(%arg0: i32, %arg1: i32) -> (i32, i32) {
    %c0_i32 = arith.constant 0 : i32
    %c0_i32_0 = arith.constant 0 : i32
    return %arg0, %c0_i32 : i32, i32
  }
  func.func @transform_1(%arg0: i32, %arg1: i32) -> (i32, i32) {
    %c0_i32 = arith.constant 0 : i32
    %c0_i32_0 = arith.constant 0 : i32
    return %c0_i32, %arg1 : i32, i32
  }
  func.func @transform_2(%arg0: i32, %arg1: i32) -> (i32, i32) {
    %c0_i32 = arith.constant 0 : i32
    %c0_i32_0 = arith.constant 0 : i32
    return %c0_i32, %arg1 : i32, i32
  }
  func.func @transform_3(%arg0: i32, %arg1: i32) -> (i32, i32) {
    %c0_i32 = arith.constant 0 : i32
    %c0_i32_0 = arith.constant 0 : i32
    return %arg1, %c0_i32 : i32, i32
  }
  func.func @transform_4(%arg0: i32, %arg1: i32) -> (i32, i32) {
    %c0_i32 = arith.constant 0 : i32
    %c0_i32_0 = arith.constant 0 : i32
    %c0_i32_1 = arith.constant 0 : i32
    return %c0_i32, %c0_i32_0 : i32, i32
  }
  func.func @transform_5(%arg0: i32, %arg1: i32) -> (i32, i32) {
    %c0_i32 = arith.constant 0 : i32
    %c0_i32_0 = arith.constant 0 : i32
    return %arg0, %c0_i32 : i32, i32
  }
}

</mosaic_0001>

<bundles_post_ra>
// kernel: residual_block_forward.1
= control target key start
LH: loop header
LB: loop body
LE: loop exit
PB: predicated region body
PF: predicated region fallthrough
CT: control target
= control target key end

     0   :  { %s1962_s0 = inlined_call_operand.hbm [shape: f32[16,128], index: 0, kind: input, shape index: {}]   ;;  %s1963_s1 = inlined_call_operand.hbm [shape: bf16[128,1024], index: 1, kind: input, shape index: {}]   ;;  %s1964_s2 = inlined_call_operand.vmem [shape: f32[1,1024], index: 2, kind: input, shape index: {}]   ;;  %s1965_s3 = inlined_call_operand.hbm [shape: bf16[1024,128], index: 3, kind: input, shape index: {}]   ;;  %s1966_s4 = inlined_call_operand.vmem [shape: f32[1,128], index: 4, kind: input, shape index: {}]   ;;  %s1967_s5 = inlined_call_operand.hbm [shape: f32[16,128], index: 5, kind: output, shape index: {}]  }
   0x1   :  { %1974 = sst [smem:[#allocation13_spill]] %s1963_s1 }
   0x2   :  { %10 = vsyncpa [#allocation4], 0 }
   0x3   :  { %11 = vsyncpa [#allocation7], 0 }
   0x4   :  { %13 = vsyncpa [#allocation7 + $0x1], 0 }
   0x5   :  { %14 = vsyncpa [#allocation5], 0  ;;  %s1654_s18 = smov 0   ;;  %s1656_s19 = smov 0  }
   0x6   :  { %s1658_s20 = smov 0   ;;  %s1660_s21 = smov 0  }
   0x7   :  { %s1662_s22 = smov 0   ;;  %s1664_s23 = smov 0  }
   0x8 LB: > { %s29_s24 = sadd.s32 1, %s1603_s22  ;;  %s65_s25 = sadd.s32 1, %s1595_s20  ;;  %s1607_s23 = sphi %s1664_s23, %s20_s23   ;;  %s1603_s22 = sphi %s1662_s22, %s1991_s22   ;;  %s1599_s21 = sphi %s1660_s21, %s1990_s21   ;;  %s1595_s20 = sphi %s1658_s20, %s1989_s20   ;;  %s1591_s19 = sphi %s1656_s19, %s1988_s19   ;;  %s1587_s18 = sphi %s1654_s18, %s1987_s18  }
   0x9   : > { %p30_p0 = scmp.ge.s32.totalorder %s29_s24, 2  ;;  %p72_p1 = scmp.ne.s32.totalorder %s1595_s20, %s1591_s19 }
   0xa   : > { %p73_p2 = scmp.eq.s32.totalorder %s1607_s23, 0  ;;  %p1290_p4 = scmp.lt.s32.totalorder %s1607_s23, 2 }
   0xb   : > { %s1993_s24 = smov (%p30_p0, %s29_s24), 0  ;;  %s220_s27 = sand.u32 1, %s1607_s23  }
   0xc   : > { %p74_p3 = por %p73_p2, %p72_p1  ;;  %s62_s26 = ssub.s32 %s1603_s22, %s1993_s24 }
   0xd   : > { %p63_p5 = scmp.eq.s32.totalorder %s62_s26, 0  ;;  %s222_s28 = sand.u32 1, %s1595_s20  }
   0xe   : > { %s1220_s29 = sshll.u32 %s1603_s22, 8  ;;  %s1700_s6 = sshll.u32 %s222_s28, 8 }
   0xf   : > { %s1698_s30 = scalar_select %p63_p5, %s1595_s20, %s65_s25  }
  0x10   : > { %s1975_s1 = sld [smem:[#allocation13_spill]]  ;;  %p1707_p6 = pnand %p1290_p4, %p74_p3 }
  0x11   : > { %s224_s11 = scalar_lea.vmem [#allocation6], %s1700_s6  ;;  %s1714_s13 = scalar_lea.sflag [#allocation7], %s220_s27 }
  0x12   : > { %s1976_s10 = scalar_select %p1707_p6, 1, 0 }
  0x13   : > { %s231_s12 = sshll.u32 %s224_s11, 4  ;;  %p1969_p8 = pneg %p1707_p6  ;;  %s1712_s12 = int_to_ptr.vmem [resolvable:$true] %s231_s12 }
  0x16   : > { %s1705_s9 = scalar_lea.hbm %s1975_s1, %s1220_s29  ;;  %s1440_s17 = scalar_lea.hbm %s1975_s1, 8192 }
  0x17   : > { %s1435_s14 = scalar_lea.hbm %s1705_s9, 4096  ;;  %p1441_p11 = scmp.lt.u32.totalorder %s1705_s9, %s1975_s1 }
  0x18   : > { %p1436_p7 = scmp.ne.s32.totalorder %s1705_s9, %s1435_s14  ;;  %p1442_p12 = scmp.lt.u32.totalorder %s1440_s17, %s1435_s14 }
  0x19   : > { %p1444_p0 = scmp.lt.u32.totalorder %s1435_s14, %s1705_s9 }
  0x1a   : > { %p1438_p9 = pnand %p1969_p8, %p1436_p7  ;;  %p1443_p13 = por %p1442_p12, %p1441_p11 }
  0x1c   : > { %p1439_p10 = pneg %p1438_p9  ;;  %p1445_p1 = por %p1444_p0, %p1443_p13 }
  0x1e   : > { %p1446_p2 = pnand %p1445_p1, %p1439_p10 }
  0x20   : > { %1449 = shalt.err (!%p1446_p2)
}
  0x21   : > { %s1450_s27 = scalar_lea.vmem %s1712_s12, 4096  ;;  %s1609_s28 = smov [#allocation6]  }
  0x22   : > { %p1451_p3 = scmp.ne.s32.totalorder %s1712_s12, %s1450_s27  ;;  %s1455_s29 = sshll.u32 %s1609_s28, 4  ;;  %s1456_s29 = int_to_ptr.vmem [resolvable:$false] %s1455_s29 }
  0x23   : > { %s1457_s7 = scalar_lea.vmem %s1456_s29, 8192  ;;  %p1458_p7 = scmp.lt.s32.totalorder %s1712_s12, %s1456_s29 }
  0x24   : > { %p1453_p4 = pnand %p1451_p3, %p1969_p8  ;;  %p1459_p9 = scmp.lt.s32.totalorder %s1457_s7, %s1450_s27 }
  0x26   : > { %p1454_p5 = pneg %p1453_p4  ;;  %p1460_p11 = por %p1459_p9, %p1458_p7 }
  0x28   : > { %p1461_p12 = pnand %p1460_p11, %p1454_p5 }
  0x2a   : > { %1464 = shalt.err (!%p1461_p12)
}
  0x2b   : > { %s1610_s8 = smov 512   ;;  %s1611_s11 = smov 256  }
  0x2c   : > { %s1612_s14 = smov 16   ;;  %s1743_s15 = sadd.s32 4294967295, %s1607_s23  }
  0x2d   : > { %1285 = dma.hbm_to_vmem [thread:$0]  (!%p1707_p6), %s1705_s9, 4096, %s1712_s12, %s1714_s13, %s1610_s8, %s1611_s11, %s1612_s14  }
  0x2e   : > { %p78_p10 = scmp.ne.s32.totalorder %s1591_s19, %s1587_s18  ;;  %p1968_p13 = scmp.eq.s32.totalorder %s1743_s15, 0 }
  0x2f   : > { %p1135_p0 = scmp.ge.s32.totalorder %s1607_s23, 1  ;;  %p188_p1 = scmp.lt.s32.totalorder %s1607_s23, 3 }
  0x30   : > { %p1752_p2 = por %p1968_p13, %p78_p10  ;;  %s1613_s9 = smov [#allocation3]  }
  0x31   : > { %p1756_p3 = pnand %p1135_p0, %p188_p1  ;;  %s203_s12 = sshll.u32 %s1613_s9, 4  ;;  %s1760_s12 = int_to_ptr.vmem [resolvable:$true] %s203_s12 }
  0x32   : > { %s1977_s16 = scalar_select %p1752_p2, 1, 0 }
  0x33   : > { %s1978_s17 = scalar_select %p1756_p3, 1, 0 }
  0x34   : > { %p1278_p4 = pneg %p1756_p3  ;;  %s1221_s18 = sshll.u32 %s1603_s22, 12 }
  0x35   : > { %s1774_s28 = scalar_lea.hbm %s1965_s3, %s1221_s18  ;;  %s253_s29 = scalar_lea.vmem [#allocation8], %s1700_s6 }
  0x36   : > { %p1767_p5 = pnand %p1278_p4, %p1968_p13  ;;  %s260_s7 = sshll.u32 %s253_s29, 4  ;;  %s1777_s7 = int_to_ptr.vmem [resolvable:$true] %s260_s7 }
  0x37   : > { %s1465_s14 = scalar_lea.hbm %s1962_s0, 256 }
  0x38   : > { %p1466_p7 = scmp.ne.s32.totalorder %s1962_s0, %s1465_s14  ;;  %p1467_p9 = pneg %p1767_p5 }
  0x39   : > { %p1472_p10 = scmp.lt.u32.totalorder %s1465_s14, %s1962_s0 }
  0x3a   : > { %p1468_p11 = pnand %p1467_p9, %p1466_p7 }
  0x3c   : > { %p1469_p12 = pneg %p1468_p11 }
  0x3e   : > { %p1474_p0 = pnand %p1472_p10, %p1469_p12 }
  0x40   : > { %1477 = shalt.err (!%p1474_p0)
}
  0x41   : > { %s1478_s6 = scalar_lea.vmem %s1760_s12, 256  ;;  %p1486_p8 = scmp.lt.s32.totalorder %s1760_s12, %s1760_s12 }
  0x42   : > { %p1479_p1 = scmp.ne.s32.totalorder %s1760_s12, %s1478_s6  ;;  %p1487_p2 = scmp.lt.s32.totalorder %s1478_s6, %s1478_s6 }
  0x44   : > { %p1481_p4 = pnand %p1479_p1, %p1467_p9  ;;  %p1488_p3 = por %p1487_p2, %p1486_p8 }
  0x46   : > { %p1482_p13 = pneg %p1481_p4 }
  0x48   : > { %p1489_p6 = pnand %p1488_p3, %p1482_p13 }
  0x4a   : > { %1492 = shalt.err (!%p1489_p6)
}
  0x4b   : > { %s1614_s1 = smov 128   ;;  %s1615_s18 = smov 8  }
  0x4c   : > { %1281 = dma.hbm_to_vmem [thread:$0]  (!%p1767_p5), %s1962_s0, 256, %s1760_s12, [#allocation4], %s1614_s1, %s1614_s1, %s1615_s18  }
  0x4d   : > { %s1493_s11 = scalar_lea.hbm %s1774_s28, 4096  ;;  %p1980_p9 = scmp.ne.s32.totalorder %s1976_s10, 0 }
  0x4e   : > { %p1494_p7 = scmp.ne.s32.totalorder %s1774_s28, %s1493_s11  ;;  %s1498_s26 = scalar_lea.hbm %s1965_s3, 8192 }
  0x4f   : > { %p1981_p8 = pneg %p1980_p9  ;;  %p1499_p2 = scmp.lt.u32.totalorder %s1774_s28, %s1965_s3 }
  0x50   : > { %p1500_p3 = scmp.lt.u32.totalorder %s1498_s26, %s1493_s11  ;;  %p1502_p12 = scmp.lt.u32.totalorder %s1493_s11, %s1774_s28 }
  0x51   : > { %p1496_p13 = pnand %p1494_p7, %p1981_p8 }
  0x52   : > { %p1501_p11 = por %p1500_p3, %p1499_p2 }
  0x53   : > { %p1497_p6 = pneg %p1496_p13 }
  0x54   : > { %p1503_p10 = por %p1502_p12, %p1501_p11 }
  0x56   : > { %p1504_p0 = pnand %p1503_p10, %p1497_p6 }
  0x58   : > { %1507 = shalt.err (!%p1504_p0)
}
  0x59   : > { %s1508_s12 = scalar_lea.vmem %s1777_s7, 4096  ;;  %p1982_p1 = pmov %p1981_p8 }
  0x5a   : > { %p1509_p5 = scmp.ne.s32.totalorder %s1777_s7, %s1508_s12  ;;  %s1616_s25 = smov [#allocation8]  }
  0x5b   : > { %s1513_s1 = sshll.u32 %s1616_s25, 4  ;;  %s1514_s1 = int_to_ptr.vmem [resolvable:$false] %s1513_s1 }
  0x5c   : > { %p1511_p4 = pnand %p1509_p5, %p1982_p1  ;;  %s1515_s18 = scalar_lea.vmem %s1514_s1, 8192 }
  0x5d   : > { %p1516_p8 = scmp.lt.s32.totalorder %s1777_s7, %s1514_s1  ;;  %p1517_p13 = scmp.lt.s32.totalorder %s1515_s18, %s1508_s12 }
  0x5e   : > { %p1512_p7 = pneg %p1511_p4 }
  0x5f   : > { %p1518_p2 = por %p1517_p13, %p1516_p8 }
  0x61   : > { %p1519_p3 = pnand %p1518_p2, %p1512_p7 }
  0x63   : > { %1522 = shalt.err (!%p1519_p3)
}
  0x64   : > { %s1617_s29 = smov 64   ;;  %s1618_s8 = smov 4  }
  0x65   : > { %1288 = dma.hbm_to_vmem [thread:$0]  (!%p1980_p9), %s1774_s28, 4096, %s1777_s7, %s1714_s13, %s1617_s29, %s1617_s29, %s1618_s8  }
  0x66   : > { %p1983_p6 = scmp.ne.s32.totalorder %s1978_s17, 0 }
  0x67   : > { %p1984_p11 = scmp.eq.s32.totalorder (!%p1983_p6), %s1743_s15, 0 }
  0x68   : > { %272 = sbr.rel (%p1983_p6) target bundleno = 643 (0x283), region = 40 }
  0x6f   : > { %1574 = dma.done.wait (%p1984_p11), [#allocation4], 256   ;;  %p1985_p12 = pmov %p1984_p11 }
  0x70   : > { %s278_s11 = sand.u32 1, %s1743_s15   ;;  %s280_s14 = sand.u32 1, %s1591_s19  }
  0x71   : > { %1576 = vsyncadd (%p1985_p12), [#allocation4], 4294967040  ;;  %s1146_s9 = sshll.u32 %s280_s14, 8  ;;  %s279_s26 = scalar_lea.sflag [#allocation7], %s278_s11 }
  0x72   : > { %s1832_s27 = scalar_lea.vmem [#allocation6], %s1146_s9  ;;  %p1986_p10 = scmp.ne.s32.totalorder %s1977_s16, 0 }
  0x74   : > { %1578 = dma.done.wait (%p1986_p10), %s279_s26, 8192  }
  0x75   : > { %1580 = vsyncadd (%p1986_p10), %s279_s26, 4294959104  ;;  %s1148_s10 = sshll.u32 %s1599_s21, 2  ;;  %s1845_s7 = scalar_lea.vmem [#allocation8], %s1146_s9 }
  0x76   : > { %p325_p9 = scmp.lt.s32.totalorder %s1148_s10, 7  ;;  %p1149_p0 = scmp.ne.s32.totalorder %s1599_s21, 0 }
  0x77   : > { %v1619_v0 = vmov (!%p1149_p0), 0.0  }
  0x78   : > { %s1995_s10 = smov (!%p325_p9, %s1148_s10), 7  ;;  %335 = sbr.rel (%p1149_p0) target bundleno = 127 (0x7f), region = 56 }
  0x79   : > { %s327_s28 = scalar_lea.vmem %s1964_s2, %s1995_s10  ;;  %336 = vst [vmem:[#allocation2] sm:$0xff] (!%p1149_p0), %v1619_v0  ;;  %337 = vst [vmem:[#allocation2 + $0x8] sm:$0xff] (!%p1149_p0), %v1619_v0 }
  0x7f PF: > { %v1355_v1 = vld [vmem:[%s1832_s27 + $0x4] ss:$16 sps:$4 sm:$0xff]   ;;  %v1357_v2 = vld [vmem:[%s1832_s27 + $0xc] ss:$16 sps:$4 sm:$0xff]   ;;  %v1620_v3 = vmov 0   ;;  %p1214_p5 = scmp.ne.s32.totalorder %s1599_s21, 1 }
  0x80   : > { %587 = vmatprep.mubr.bf16.mxu0 %v1620_v3  ;;  %630 = vmatprep.mubr.bf16.mxu1 %v1620_v3  ;;  %v1359_v4 = vld [vmem:[%s1832_s27] ss:$16 sps:$4 sm:$0xff]   ;;  %v1360_v5 = vld [vmem:[%s1832_s27 + $0x8] ss:$16 sps:$4 sm:$0xff]   ;;  %v1361_v6 = vld [vmem:[%s1832_s27 + $0x24] ss:$16 sps:$4 sm:$0xff]  }
  0x81   : > { %555 = vmatprep.subr.bf16.mxu0 %v1355_v1  ;;  %598 = vmatprep.subr.bf16.mxu1 %v1357_v2  ;;  %v1363_v7 = vld [vmem:[%s1832_s27 + $0x2c] ss:$16 sps:$4 sm:$0xff]   ;;  %v1365_v8 = vld [vmem:[%s1832_s27 + $0x20] ss:$16 sps:$4 sm:$0xff]   ;;  %v1366_v9 = vld [vmem:[%s1832_s27 + $0x28] ss:$16 sps:$4 sm:$0xff]  }
  0x82   : > { %556 = vmatpush1.bf16.msra.mxu0 %v1359_v4  ;;  %599 = vmatpush1.bf16.msra.mxu1 %v1360_v5  ;;  %v1367_v10 = vld [vmem:[%s1832_s27 + $0x44] ss:$16 sps:$4 sm:$0xff]   ;;  %v1369_v11 = vld [vmem:[%s1832_s27 + $0x4c] ss:$16 sps:$4 sm:$0xff]   ;;  %v1371_v12 = vld [vmem:[%s1832_s27 + $0x40] ss:$16 sps:$4 sm:$0xff]   ;;  %v375_v5 = vlaneseq }
  0x83   : > { %557 = vmatprep.subr.bf16.mxu0 %v1361_v6  ;;  %600 = vmatprep.subr.bf16.mxu1 %v1363_v7  ;;  %v1372_v13 = vld [vmem:[%s1832_s27 + $0x48] ss:$16 sps:$4 sm:$0xff]   ;;  %v1373_v14 = vld [vmem:[%s1832_s27 + $0x64] ss:$16 sps:$4 sm:$0xff]   ;;  %v1375_v15 = vld [vmem:[%s1832_s27 + $0x6c] ss:$16 sps:$4 sm:$0xff]  }
  0x84   : > { %v1377_v16 = vld [vmem:[%s1832_s27 + $0x60] ss:$16 sps:$4 sm:$0xff]   ;;  %v1378_v17 = vld [vmem:[%s1832_s27 + $0x68] ss:$16 sps:$4 sm:$0xff]   ;;  %v1379_v18 = vld [vmem:[%s1832_s27 + $0x84] ss:$16 sps:$4 sm:$0xff]  }
  0x85   : > { %v1381_v19 = vld [vmem:[%s1832_s27 + $0x8c] ss:$16 sps:$4 sm:$0xff]   ;;  %v1383_v20 = vld [vmem:[%s1832_s27 + $0x80] ss:$16 sps:$4 sm:$0xff]   ;;  %v1384_v21 = vld [vmem:[%s1832_s27 + $0x88] ss:$16 sps:$4 sm:$0xff]  }
  0x86   : > { %558 = vmatpush1.bf16.msra.mxu0 %v1365_v8  ;;  %601 = vmatpush1.bf16.msra.mxu1 %v1366_v9  ;;  %v1385_v22 = vld [vmem:[%s1832_s27 + $0xa4] ss:$16 sps:$4 sm:$0xff]   ;;  %v1387_v23 = vld [vmem:[%s1832_s27 + $0xac] ss:$16 sps:$4 sm:$0xff]   ;;  %v1389_v24 = vld [vmem:[%s1832_s27 + $0xa0] ss:$16 sps:$4 sm:$0xff]  }
  0x87   : > { %559 = vmatprep.subr.bf16.mxu0 %v1367_v10  ;;  %602 = vmatprep.subr.bf16.mxu1 %v1369_v11  ;;  %v1390_v25 = vld [vmem:[%s1832_s27 + $0xa8] ss:$16 sps:$4 sm:$0xff]   ;;  %v1391_v26 = vld [vmem:[%s1832_s27 + $0xc4] ss:$16 sps:$4 sm:$0xff]   ;;  %v1393_v27 = vld [vmem:[%s1832_s27 + $0xcc] ss:$16 sps:$4 sm:$0xff]  }
  0x88   : > { %v1395_v28 = vld [vmem:[%s1832_s27 + $0xc0] ss:$16 sps:$4 sm:$0xff]   ;;  %v1396_v29 = vld [vmem:[%s1832_s27 + $0xc8] ss:$16 sps:$4 sm:$0xff]   ;;  %v1397_v30 = vld [vmem:[%s1832_s27 + $0xe4] ss:$16 sps:$4 sm:$0xff]  }
  0x89   : > { %v1399_v31 = vld [vmem:[%s1832_s27 + $0xec] ss:$16 sps:$4 sm:$0xff]   ;;  %v1401_v32 = vld [vmem:[%s1832_s27 + $0xe0] ss:$16 sps:$4 sm:$0xff]   ;;  %v1402_v33 = vld [vmem:[%s1832_s27 + $0xe8] ss:$16 sps:$4 sm:$0xff]  }
  0x8a   : > { %560 = vmatpush1.bf16.msra.mxu0 %v1371_v12  ;;  %603 = vmatpush1.bf16.msra.mxu1 %v1372_v13  ;;  %v338_v34 = vld [vmem:[#allocation3] sm:$0xff]  ;;  %v339_v35 = vld [vmem:[#allocation3 + $0x8] sm:$0xff]  ;;  %v1403_v36 = vld [vmem:[%s1845_s7 + $0x40] sm:$0xff]   ;;  %v376_v6 = vshrl.u32 %v375_v5, 7 }
  0x8b   : > { %561 = vmatprep.subr.bf16.mxu0 %v1373_v14  ;;  %604 = vmatprep.subr.bf16.mxu1 %v1375_v15  ;;  %v1404_v37 = vld [vmem:[%s1845_s7 + $0xc0] sm:$0xff]   ;;  %v340_v39 = vpack.c.bf16 %v339_v35, %v338_v34  ;;  %v1407_v41 = vld [vmem:[%s1845_s7 + $0x48] sm:$0xff]   ;;  %v1411_v45 = vld [vmem:[%s1845_s7 + $0x50] sm:$0xff]  }
  0x8c   : > { %v1405_v38 = vld [vmem:[%s1845_s7] sm:$0xff]   ;;  %v1408_v42 = vld [vmem:[%s1845_s7 + $0xc8] sm:$0xff]   ;;  %v1412_v46 = vld [vmem:[%s1845_s7 + $0xd0] sm:$0xff]   ;;  %v377_v7 = vsub.s32 0, %v376_v6  ;;  %v385_v8 = vsub.s32 2, %v376_v6  ;;  %v381_v10 = vsub.s32 1, %v376_v6 }
  0x8d   : > { %v1406_v40 = vld [vmem:[%s1845_s7 + $0x80] sm:$0xff]   ;;  %v1409_v43 = vld [vmem:[%s1845_s7 + $0x8] sm:$0xff]   ;;  %v1413_v47 = vld [vmem:[%s1845_s7 + $0x10] sm:$0xff]   ;;  %v389_v11 = vsub.s32 3, %v376_v6 }
  0x8e   : > { %562 = vmatpush1.bf16.msra.mxu0 %v1377_v16  ;;  %605 = vmatpush1.bf16.msra.mxu1 %v1378_v17  ;;  %v1410_v44 = vld [vmem:[%s1845_s7 + $0x88] sm:$0xff]   ;;  %v1414_v48 = vld [vmem:[%s1845_s7 + $0x90] sm:$0xff]   ;;  %v1415_v49 = vld [vmem:[%s1845_s7 + $0x58] sm:$0xff]  }
  0x8f   : > { %563 = vmatprep.subr.bf16.mxu0 %v1379_v18  ;;  %606 = vmatprep.subr.bf16.mxu1 %v1381_v19  ;;  %v1416_v50 = vld [vmem:[%s1845_s7 + $0xd8] sm:$0xff]   ;;  %v1419_v53 = vld [vmem:[%s1845_s7 + $0x60] sm:$0xff]   ;;  %v1423_v57 = vld [vmem:[%s1845_s7 + $0x68] sm:$0xff]  }
  0x90   : > { %v1417_v51 = vld [vmem:[%s1845_s7 + $0x18] sm:$0xff]   ;;  %v1420_v54 = vld [vmem:[%s1845_s7 + $0xe0] sm:$0xff]   ;;  %v1424_v58 = vld [vmem:[%s1845_s7 + $0xe8] sm:$0xff]  }
  0x91   : > { %v1418_v52 = vld [vmem:[%s1845_s7 + $0x98] sm:$0xff]   ;;  %v1421_v55 = vld [vmem:[%s1845_s7 + $0x20] sm:$0xff]   ;;  %v1425_v59 = vld [vmem:[%s1845_s7 + $0x28] sm:$0xff]  }
  0x92   : > { %564 = vmatpush1.bf16.msra.mxu0 %v1383_v20  ;;  %607 = vmatpush1.bf16.msra.mxu1 %v1384_v21  ;;  %v1422_v56 = vld [vmem:[%s1845_s7 + $0xa0] sm:$0xff]   ;;  %v1426_v60 = vld [vmem:[%s1845_s7 + $0xa8] sm:$0xff]   ;;  %v1427_v61 = vld [vmem:[%s1845_s7 + $0x70] sm:$0xff]  }
  0x93   : > { %565 = vmatprep.subr.bf16.mxu0 %v1385_v22  ;;  %608 = vmatprep.subr.bf16.mxu1 %v1387_v23  ;;  %v1428_v62 = vld [vmem:[%s1845_s7 + $0xf0] sm:$0xff]   ;;  %v1431_v1 = vld [vmem:[%s1845_s7 + $0x78] sm:$0xff]   ;;  %v373_v9 = vld [vmem:[%s327_s28] sm:$0xf] }
  0x94   : > { %v1429_v63 = vld [vmem:[%s1845_s7 + $0x30] sm:$0xff]   ;;  %v1432_v2 = vld [vmem:[%s1845_s7 + $0xf8] sm:$0xff]   ;;  %v378_v12 = vrot.slane %v373_v9, %v377_v7  ;;  %v386_v13 = vrot.slane %v373_v9, %v385_v8  ;;  %v382_v14 = vrot.slane %v373_v9, %v381_v10  ;;  %v390_v15 = vrot.slane %v373_v9, %v389_v11 }
  0x95   : > { %v1430_v0 = vld [vmem:[%s1845_s7 + $0xb0] sm:$0xff]   ;;  %v1433_v3 = vld [vmem:[%s1845_s7 + $0x38] sm:$0xff]  }
  0x96   : > { %566 = vmatpush1.bf16.msra.mxu0 %v1389_v24  ;;  %609 = vmatpush1.bf16.msra.mxu1 %v1390_v25  ;;  %v1434_v4 = vld [vmem:[%s1845_s7 + $0xb8] sm:$0xff]  }
  0x97   : > { %567 = vmatprep.subr.bf16.mxu0 %v1391_v26  ;;  %610 = vmatprep.subr.bf16.mxu1 %v1393_v27 }
  0x9a   : > { %568 = vmatpush1.bf16.msra.mxu0 %v1395_v28  ;;  %611 = vmatpush1.bf16.msra.mxu1 %v1396_v29 }
  0x9b   : > { %569 = vmatprep.subr.bf16.mxu0 %v1397_v30  ;;  %612 = vmatprep.subr.bf16.mxu1 %v1399_v31 }
  0x9e   : > { %570 = vmatpush1.bf16.msra.mxu0 %v1401_v32  ;;  %613 = vmatpush1.bf16.msra.mxu1 %v1402_v33 }
  0x9f   : > { %1222 = vmatprep.subr.bf16.mxu0 %v1403_v36  ;;  %1244 = vmatprep.subr.bf16.mxu1 %v1404_v37 }
  0xa1   : > { %588 = vmatmul.mubr.bf16.vlgmr.msra.gmra.mrb[0].mxu0 %v340_v39  ;;  %631 = vmatmul.mubr.bf16.vlgmr.msra.gmra.mrb[0].mxu1 %v340_v39 }
  0xa2   : > { %1223 = vmatpush3.bf16.msra.mxu0 %v1405_v38  ;;  %1245 = vmatpush3.bf16.msra.mxu1 %v1406_v40 }
  0xa3   : > { %1224 = vmatprep.subr.bf16.mxu0 %v1407_v41  ;;  %1246 = vmatprep.subr.bf16.mxu1 %v1408_v42 }
  0xa6   : > { %1225 = vmatpush3.bf16.msra.mxu0 %v1409_v43  ;;  %1247 = vmatpush3.bf16.msra.mxu1 %v1410_v44 }
  0xa7   : > { %1226 = vmatprep.subr.bf16.mxu0 %v1411_v45  ;;  %1248 = vmatprep.subr.bf16.mxu1 %v1412_v46 }
  0xaa   : > { %1227 = vmatpush3.bf16.msra.mxu0 %v1413_v47  ;;  %1249 = vmatpush3.bf16.msra.mxu1 %v1414_v48 }
  0xab   : > { %1228 = vmatprep.subr.bf16.mxu0 %v1415_v49  ;;  %1250 = vmatprep.subr.bf16.mxu1 %v1416_v50 }
  0xae   : > { %1229 = vmatpush3.bf16.msra.mxu0 %v1417_v51  ;;  %1251 = vmatpush3.bf16.msra.mxu1 %v1418_v52  ;;  %v649_v52 = vld [vmem:[#allocation2] sm:$0xff] }
  0xaf   : > { %1230 = vmatprep.subr.bf16.mxu0 %v1419_v53  ;;  %1252 = vmatprep.subr.bf16.mxu1 %v1420_v54 }
  0xb2   : > { %1231 = vmatpush3.bf16.msra.mxu0 %v1421_v55  ;;  %1253 = vmatpush3.bf16.msra.mxu1 %v1422_v56 }
  0xb3   : > { %1232 = vmatprep.subr.bf16.mxu0 %v1423_v57  ;;  %1254 = vmatprep.subr.bf16.mxu1 %v1424_v58  ;;  %v650_v58 = vld [vmem:[#allocation2 + $0x8] sm:$0xff] }
  0xb6   : > { %1233 = vmatpush3.bf16.msra.mxu0 %v1425_v59  ;;  %1255 = vmatpush3.bf16.msra.mxu1 %v1426_v60 }
  0xb7   : > { %1234 = vmatprep.subr.bf16.mxu0 %v1427_v61  ;;  %1256 = vmatprep.subr.bf16.mxu1 %v1428_v62 }
  0xba   : > { %1235 = vmatpush3.bf16.msra.mxu0 %v1429_v63  ;;  %1257 = vmatpush3.bf16.msra.mxu1 %v1430_v0  ;;  %v1215_v63 = vld [vmem:[%s1966_s4] ss:$0 sm:$0xff] (!%p1214_p5)  ;;  %v1012_v0 = vld [vmem:[#allocation3] sm:$0xff] (!%p1214_p5) }
  0xbb   : > { %1236 = vmatprep.subr.bf16.mxu0 %v1431_v1  ;;  %1258 = vmatprep.subr.bf16.mxu1 %v1432_v2 }
  0xbe   : > { %1237 = vmatpush3.bf16.msra.mxu0 %v1433_v3  ;;  %1259 = vmatpush3.bf16.msra.mxu1 %v1434_v4  ;;  %v1013_v3 = vld [vmem:[#allocation3 + $0x8] sm:$0xff] (!%p1214_p5) }
 0x174   : > { %v589_v16 = vpop.f32.mrb[0].mxu0  ;;  %v632_v17 = vpop.f32.mrb[0].mxu1 }
 0x175   : > { %v590_v18 = vadd.f32 %v589_v16, %v378_v12  ;;  %v633_v19 = vadd.f32 %v632_v17, %v386_v13  ;;  %v591_v20 = vpop.f32.mrb[1].mxu0  ;;  %v634_v21 = vpop.f32.mrb[1].mxu1 }
 0x176   : > { %v592_v22 = vadd.f32 %v591_v20, %v382_v14  ;;  %v635_v23 = vadd.f32 %v634_v21, %v390_v15  ;;  %v593_v24 = vpop.f32.mrb[2].mxu0  ;;  %v636_v25 = vpop.f32.mrb[2].mxu1 }
 0x177   : > { %v594_v26 = vadd.f32 %v593_v24, %v378_v12  ;;  %v637_v27 = vadd.f32 %v636_v25, %v386_v13  ;;  %v595_v28 = vpop.f32.mrb[3].mxu0  ;;  %v638_v29 = vpop.f32.mrb[3].mxu1  ;;  %v641_v32 = vmax.f32 %v590_v18, 0.0  ;;  %v643_v33 = vmax.f32 %v633_v19, 0.0 }
 0x178   : > { %v596_v30 = vadd.f32 %v595_v28, %v382_v14  ;;  %v639_v31 = vadd.f32 %v638_v29, %v390_v15  ;;  %v642_v36 = vmax.f32 %v592_v22, 0.0  ;;  %v644_v37 = vmax.f32 %v635_v23, 0.0 }
 0x179   : > { %v645_v34 = vmax.f32 %v594_v26, 0.0  ;;  %v647_v35 = vmax.f32 %v637_v27, 0.0 }
 0x17a   : > { %v646_v38 = vmax.f32 %v596_v30, 0.0  ;;  %v648_v39 = vmax.f32 %v639_v31, 0.0 }
 0x17b   : > { %v651_v40 = vpack.c.bf16 %v645_v34, %v641_v32  ;;  %v653_v41 = vpack.c.bf16 %v647_v35, %v643_v33 }
 0x17c   : > { %v652_v42 = vpack.c.bf16 %v646_v38, %v642_v36  ;;  %v654_v43 = vpack.c.bf16 %v648_v39, %v644_v37 }
 0x17e   : > { %943 = vmatprep.mubr.bf16.mxu0 %v652_v42  ;;  %984 = vmatprep.mubr.bf16.mxu1 %v654_v43 }
 0x17f   : > { %944 = vmatmul.mubr.bf16.vlgmr.msra.gmra.mrb[4].mxu0 %v651_v40  ;;  %985 = vmatmul.mubr.bf16.vlgmr.msra.gmra.mrb[4].mxu1 %v653_v41 }
 0x252   : > { %v1238_v44 = vpop.f32.mrb[4].mxu0  ;;  %v1260_v45 = vpop.f32.mrb[4].mxu1 }
 0x253   : > { %v1239_v46 = vpop.f32.mrb[5].mxu0  ;;  %v1261_v47 = vpop.f32.mrb[5].mxu1 }
 0x254   : > { %v1240_v48 = vadd.f32 %v1239_v46, %v1238_v44  ;;  %v1262_v49 = vadd.f32 %v1261_v47, %v1260_v45  ;;  %v1241_v50 = vpop.f32.mrb[6].mxu0  ;;  %v1263_v51 = vpop.f32.mrb[6].mxu1 }
 0x255   : > { %v1242_v53 = vpop.f32.mrb[7].mxu0  ;;  %v1264_v54 = vpop.f32.mrb[7].mxu1 }
 0x256   : > { %v987_v55 = vadd.f32 %v1262_v49, %v1240_v48  ;;  %v1243_v56 = vadd.f32 %v1242_v53, %v1241_v50  ;;  %v1265_v57 = vadd.f32 %v1264_v54, %v1263_v51  ;;  %1000 = sbr.rel (%p1214_p5) target bundleno = 617 (0x269), region = 60 }
 0x258   : > { %v993_v59 = vadd.f32 %v987_v55, %v649_v52  ;;  %v990_v60 = vadd.f32 %v1265_v57, %v1243_v56 }
 0x25a   : > { %995 = vst [vmem:[#allocation2] sm:$0xff] %v993_v59  ;;  %v994_v61 = vadd.f32 %v990_v60, %v650_v58 }
 0x25c   : > { %996 = vst [vmem:[#allocation2 + $0x8] sm:$0xff] %v994_v61 }
 0x261   : > { %v1001_v62 = vld [vmem:[#allocation2] sm:$0xff] }
 0x262   : > { %v1010_v1 = vadd.f32 %v1215_v63, %v1001_v62 }
 0x263   : > { %v1002_v2 = vld [vmem:[#allocation2 + $0x8] sm:$0xff] }
 0x264   : > { %v1011_v4 = vadd.f32 %v1215_v63, %v1002_v2  ;;  %v1014_v5 = vadd.f32 %v1012_v0, %v1010_v1 }
 0x266   : > { %v1015_v6 = vadd.f32 %v1013_v3, %v1011_v4  ;;  %1016 = vst [vmem:[#allocation9] sm:$0xff] %v1014_v5 }
 0x268   : > { %1017 = vst [vmem:[#allocation9 + $0x8] sm:$0xff] %v1015_v6 }
 0x269 PF: > { %p1292_p1 = scmp.eq.s32.totalorder %s1743_s15, 1  ;;  %s1621_s21 = smov [#allocation9]  }
 0x26a   : > { %s1027_s1 = sshll.u32 %s1621_s21, 4  ;;  %s1028_s1 = int_to_ptr.vmem [resolvable:$true] %s1027_s1 }
 0x26b   : > { %s1523_s18 = scalar_lea.vmem %s1028_s1, 256  ;;  %p1530_p13 = scmp.lt.s32.totalorder %s1028_s1, %s1028_s1 }
 0x26c   : > { %p1524_p4 = scmp.ne.s32.totalorder %s1028_s1, %s1523_s18  ;;  %p1531_p2 = scmp.lt.s32.totalorder %s1523_s18, %s1523_s18 }
 0x26e   : > { %p1525_p7 = pnand %p1524_p4, %p1292_p1  ;;  %p1532_p3 = por %p1531_p2, %p1530_p13 }
 0x270   : > { %p1526_p8 = pneg %p1525_p7 }
 0x272   : > { %p1533_p6 = pnand %p1532_p3, %p1526_p8 }
 0x274   : > { %1536 = shalt.err (!%p1533_p6)
}
 0x275   : > { %s1537_s11 = scalar_lea.hbm %s1967_s5, 256 }
 0x276   : > { %p1538_p11 = scmp.ne.s32.totalorder %s1967_s5, %s1537_s11  ;;  %p1543_p9 = scmp.lt.u32.totalorder %s1537_s11, %s1967_s5 }
 0x278   : > { %p1539_p12 = pnand %p1538_p11, %p1292_p1 }
 0x27a   : > { %p1540_p10 = pneg %p1539_p12 }
 0x27c   : > { %p1545_p0 = pnand %p1543_p9, %p1540_p10 }
 0x27e   : > { %1548 = shalt.err (!%p1545_p0)
}
 0x27f   : > { %s1622_s10 = smov 128   ;;  %s1623_s13 = smov 8  }
 0x280   : > { %1275 = dma.vmem_to_hbm [thread:$0]  (%p1292_p1), %s1028_s1, 256, %s1967_s5, [#allocation5], %s1622_s10, %s1622_s10, %s1623_s13  }
 0x281   : > { %1582 = dma.done.wait (%p1292_p1), [#allocation5], 256  }
 0x282   : > { %1584 = vsyncadd (%p1292_p1), [#allocation5], 4294967040 }
 0x283 PF: > { %s20_s23 = sadd.s32 1, %s1607_s23   ;;  %s1987_s18 = smov %s1591_s19 }
 0x284   : > { %p17_p5 = scmp.ge.s32.totalorder %s20_s23, 4   ;;  %s1988_s19 = smov %s1595_s20 }
 0x285   : > { %s1989_s20 = smov %s1698_s30  ;;  %s1990_s21 = smov %s1603_s22 }
 0x286   : > { %s1991_s22 = smov %s1993_s24  ;;  %19 = sbr.rel (!%p17_p5) target bundleno = 8 (0x8), region = 106 }
 0x28d   :  { %1043 = vsyncpa [#allocation4], 1 }
 0x28e   :  { %1045 = vsyncpa [#allocation4 + $0x1], 1 }
 0x28f   :  { %1046 = vsyncpa [#allocation7], 1 }
 0x290   :  { %1048 = vsyncpa [#allocation7 + $0x1], 1 }
 0x291   :  { %1049 = vsyncpa [#allocation5], 1 }
 0x292   :  { %1051 = vsyncpa [#allocation5 + $0x1], 1 }

</bundles_post_ra>
